<compile_context>
chip_gen: v6e
topology: v6e:2x2x1
jax: 0.10.0
libtpu: 0.0.40
codegen_flags: <defaults>
</compile_context>

<pallas_src>
import jax
import jax.numpy as jnp
from jax.experimental import pallas as pl
from jax.experimental.pallas import tpu as pltpu

LAYER_NUM = 3           # -> 2 hidden Linear layers + last layer
INPUT_DIM = 32
HIDDEN_DIM = 32
OUTPUT_DIM = 4
LANE_PAD = 128          # lane padding for weight output dims / biases / mu
K_PAD = 32              # sublane (K) dim of the weight slab (multiple of 8)
BATCH = 64
MAX_TB = 512            # batch tile cap for large rollouts (B > 512)


def actor_kernel(x_ref, w_ref, b_ref, mu_ref):
    # x_ref : (TB, INPUT_DIM)        f32
    # w_ref : (3, K_PAD, LANE_PAD)   bf16  (pre-transposed, zero-padded)
    # b_ref : (3, LANE_PAD)          f32
    # mu_ref: (TB, LANE_PAD)         f32   (only [:, :OUTPUT_DIM] meaningful)
    x = x_ref[...]

    # hidden layer 1: tanh(x @ W1 + b1) -- bf16 MXU operands, f32 accumulate
    h = jnp.dot(x.astype(jnp.bfloat16), w_ref[0],
                preferred_element_type=jnp.float32)              # (TB, 128)
    h = jnp.tanh(h[:, :HIDDEN_DIM] + b_ref[0:1, :HIDDEN_DIM])    # f32 tanh, 32 lanes

    # hidden layer 2
    h = jnp.dot(h.astype(jnp.bfloat16), w_ref[1],
                preferred_element_type=jnp.float32)
    h = jnp.tanh(h[:, :HIDDEN_DIM] + b_ref[1:2, :HIDDEN_DIM])

    # last layer (no activation): lane-dense 128-wide unmasked store
    mu = jnp.dot(h.astype(jnp.bfloat16), w_ref[2],
                 preferred_element_type=jnp.float32) + b_ref[2:3, :]
    mu_ref[...] = mu.astype(mu_ref.dtype)


def _actor_forward(x, w_slab, b_slab):
    """x: (B, INPUT_DIM) f32. w_slab: (3, K_PAD, LANE_PAD) bf16. b_slab: (3, LANE_PAD) f32."""
    B = x.shape[0]
    tb = B if B <= MAX_TB else MAX_TB
    pad = (-B) % tb
    if pad:
        x = jnp.pad(x, ((0, pad), (0, 0)))       # explicit pad instead of OOB reads
    bp = B + pad

    mu_pad = pl.pallas_call(
        actor_kernel,
        out_shape=jax.ShapeDtypeStruct((bp, LANE_PAD), jnp.float32),
        grid=(bp // tb,),                                         # (1,) for B <= 512
        in_specs=[
            pl.BlockSpec((tb, INPUT_DIM), lambda i: (i, 0)),          # batch tile of x
            pl.BlockSpec((3, K_PAD, LANE_PAD), lambda i: (0, 0, 0)),  # weights: VMEM-resident
            pl.BlockSpec((3, LANE_PAD), lambda i: (0, 0)),            # biases:  VMEM-resident
        ],
        out_specs=pl.BlockSpec((tb, LANE_PAD), lambda i: (i, 0)),
        # No "parallel": at this size megacore sharding only duplicates the
        # weight DMA; grid is a single step for B <= MAX_TB anyway.
        compiler_params=pltpu.CompilerParams(
            dimension_semantics=("arbitrary",)),
    )(x, w_slab, b_slab)

    mu = mu_pad[:B, :OUTPUT_DIM]
    # trainable_std == False  =>  std = exp(zeros_like(mu)) = ones
    std = jnp.ones_like(mu)
    return mu, std


actor_forward = jax.jit(_actor_forward)


def orthogonal_init(key, out_dim, in_dim):
    """Deterministic orthogonal init matching nn.init.orthogonal_ semantics
    (rows orthonormal when out_dim <= in_dim). Returns (out_dim, in_dim)."""
    rows, cols = out_dim, in_dim
    big, small = max(rows, cols), min(rows, cols)
    a = jax.random.normal(key, (big, small), dtype=jnp.float32)
    q, r = jnp.linalg.qr(a)
    q = q * jnp.sign(jnp.diagonal(r))
    if rows < cols:
        q = q.T
    return q[:rows, :cols]


def make_params(key):
    """Pack all layer weights/biases into two slabs (3 input DMAs total)."""
    k1, k2, k3 = jax.random.split(key, 3)
    # torch Linear weights are (out, in); store transposed (in, out) for the kernel.
    w1 = orthogonal_init(k1, HIDDEN_DIM, INPUT_DIM).T     # (INPUT_DIM, HIDDEN_DIM)
    w2 = orthogonal_init(k2, HIDDEN_DIM, HIDDEN_DIM).T    # (HIDDEN_DIM, HIDDEN_DIM)
    wl = orthogonal_init(k3, OUTPUT_DIM, HIDDEN_DIM).T    # (HIDDEN_DIM, OUTPUT_DIM)

    w_slab = jnp.zeros((3, K_PAD, LANE_PAD), jnp.float32)
    w_slab = w_slab.at[0, :INPUT_DIM, :HIDDEN_DIM].set(w1)
    w_slab = w_slab.at[1, :HIDDEN_DIM, :HIDDEN_DIM].set(w2)
    w_slab = w_slab.at[2, :HIDDEN_DIM, :OUTPUT_DIM].set(wl)
    w_slab = w_slab.astype(jnp.bfloat16)                  # bf16 MXU path, 1/2 DMA bytes

    # biases zero-initialized (network_init); padded lanes stay zero.
    b_slab = jnp.zeros((3, LANE_PAD), jnp.float32)
    return w_slab, b_slab


def actor_forward_ref(x, w_slab, b_slab):
    """Pure-f32 reference of the original module semantics (loose check:
    the kernel uses bf16 weights/matmul operands with f32 accumulation)."""
    w = w_slab.astype(jnp.float32)
    h = jnp.tanh(x @ w[0, :INPUT_DIM, :HIDDEN_DIM] + b_slab[0:1, :HIDDEN_DIM])
    h = jnp.tanh(h @ w[1, :HIDDEN_DIM, :HIDDEN_DIM] + b_slab[1:2, :HIDDEN_DIM])
    mu = h @ w[2, :HIDDEN_DIM, :OUTPUT_DIM] + b_slab[2:3, :OUTPUT_DIM]
    return mu, jnp.ones_like(mu)


if __name__ == "__main__":
    key = jax.random.PRNGKey(0)
    kx, kp = jax.random.split(key)
    x = jax.random.normal(kx, (BATCH, INPUT_DIM), dtype=jnp.float32)
    w_slab, b_slab = make_params(kp)

    mu, std = jax.block_until_ready(actor_forward(x, w_slab, b_slab))

    mu_ref, std_ref = actor_forward_ref(x, w_slab, b_slab)
    assert mu.shape == (BATCH, OUTPUT_DIM) and std.shape == (BATCH, OUTPUT_DIM)
    # tolerance covers the bf16 weight/operand quantization in the kernel
    assert jnp.allclose(mu, mu_ref, atol=2e-2, rtol=2e-2)
    assert jnp.allclose(std, std_ref)

    print("KERNEL_OK")
</pallas_src>

<mosaic_0001>
module attributes {stable_mosaic.version = 11 : i64} {
  func.func @actor_kernel(%arg0: i32, %arg1: memref<64x32xf32, #tpu.memory_space<vmem>>, %arg2: memref<3x32x128xbf16, #tpu.memory_space<vmem>>, %arg3: memref<3x128xf32, #tpu.memory_space<vmem>>, %arg4: memref<64x128xf32, #tpu.memory_space<vmem>>) attributes {dimension_semantics = [#tpu.dimension_semantics<arbitrary>], iteration_bounds = array<i64: 1>, scalar_prefetch = 0 : i64, scratch_operands = 0 : i64, tpu.core_type = #tpu.core_type<tc>, window_params = [{transform_indices = @transform_0, window_bounds = array<i64: 64, 32>}, {pipeline_mode = #tpu.pipeline_mode<synchronous>, transform_indices = @transform_1, window_bounds = array<i64: 3, 32, 128>}, {pipeline_mode = #tpu.pipeline_mode<synchronous>, transform_indices = @transform_2, window_bounds = array<i64: 3, 128>}, {transform_indices = @transform_3, window_bounds = array<i64: 64, 128>}]} {
    %c0 = arith.constant 0 : index
    %c0_0 = arith.constant 0 : index
    %0 = vector.load %arg1[%c0, %c0_0] : memref<64x32xf32, #tpu.memory_space<vmem>>, vector<64x32xf32>
    %1 = arith.truncf %0 : vector<64x32xf32> to vector<64x32xbf16>
    %c0_1 = arith.constant 0 : index
    %c0_2 = arith.constant 0 : index
    %c0_3 = arith.constant 0 : index
    %2 = vector.load %arg2[%c0_1, %c0_2, %c0_3] : memref<3x32x128xbf16, #tpu.memory_space<vmem>>, vector<1x32x128xbf16>
    %3 = vector.shape_cast %2 : vector<1x32x128xbf16> to vector<32x128xbf16>
    %cst = arith.constant dense<0.000000e+00> : vector<64x128xf32>
    %4 = tpu.matmul %1, %3, %cst {dimension_numbers = #tpu.dot_dimension_numbers<[1], [0], [0], [1], [0, 0, 1, 1], [], []>} : vector<64x32xbf16>, vector<32x128xbf16>, vector<64x128xf32> -> vector<64x128xf32>
    %5 = vector.extract_strided_slice %4 {offsets = [0, 0], sizes = [64, 32], strides = [1, 1]} : vector<64x128xf32> to vector<64x32xf32>
    %c0_4 = arith.constant 0 : index
    %c0_5 = arith.constant 0 : index
    %6 = vector.load %arg3[%c0_4, %c0_5] : memref<3x128xf32, #tpu.memory_space<vmem>>, vector<1x32xf32>
    %7 = vector.broadcast %6 : vector<1x32xf32> to vector<64x32xf32>
    %8 = arith.addf %5, %7 : vector<64x32xf32>
    %9 = math.tanh %8 : vector<64x32xf32>
    %10 = arith.truncf %9 : vector<64x32xf32> to vector<64x32xbf16>
    %c1 = arith.constant 1 : index
    %c0_6 = arith.constant 0 : index
    %c0_7 = arith.constant 0 : index
    %11 = vector.load %arg2[%c1, %c0_6, %c0_7] : memref<3x32x128xbf16, #tpu.memory_space<vmem>>, vector<1x32x128xbf16>
    %12 = vector.shape_cast %11 : vector<1x32x128xbf16> to vector<32x128xbf16>
    %cst_8 = arith.constant dense<0.000000e+00> : vector<64x128xf32>
    %13 = tpu.matmul %10, %12, %cst_8 {dimension_numbers = #tpu.dot_dimension_numbers<[1], [0], [0], [1], [0, 0, 1, 1], [], []>} : vector<64x32xbf16>, vector<32x128xbf16>, vector<64x128xf32> -> vector<64x128xf32>
    %14 = vector.extract_strided_slice %13 {offsets = [0, 0], sizes = [64, 32], strides = [1, 1]} : vector<64x128xf32> to vector<64x32xf32>
    %c1_9 = arith.constant 1 : index
    %c0_10 = arith.constant 0 : index
    %15 = vector.load %arg3[%c1_9, %c0_10] : memref<3x128xf32, #tpu.memory_space<vmem>>, vector<1x32xf32>
    %16 = vector.broadcast %15 : vector<1x32xf32> to vector<64x32xf32>
    %17 = arith.addf %14, %16 : vector<64x32xf32>
    %18 = math.tanh %17 : vector<64x32xf32>
    %19 = arith.truncf %18 : vector<64x32xf32> to vector<64x32xbf16>
    %c2 = arith.constant 2 : index
    %c0_11 = arith.constant 0 : index
    %c0_12 = arith.constant 0 : index
    %20 = vector.load %arg2[%c2, %c0_11, %c0_12] : memref<3x32x128xbf16, #tpu.memory_space<vmem>>, vector<1x32x128xbf16>
    %21 = vector.shape_cast %20 : vector<1x32x128xbf16> to vector<32x128xbf16>
    %cst_13 = arith.constant dense<0.000000e+00> : vector<64x128xf32>
    %22 = tpu.matmul %19, %21, %cst_13 {dimension_numbers = #tpu.dot_dimension_numbers<[1], [0], [0], [1], [0, 0, 1, 1], [], []>} : vector<64x32xbf16>, vector<32x128xbf16>, vector<64x128xf32> -> vector<64x128xf32>
    %c2_14 = arith.constant 2 : index
    %c0_15 = arith.constant 0 : index
    %23 = vector.load %arg3[%c2_14, %c0_15] : memref<3x128xf32, #tpu.memory_space<vmem>>, vector<1x128xf32>
    %24 = vector.broadcast %23 : vector<1x128xf32> to vector<64x128xf32>
    %25 = arith.addf %22, %24 : vector<64x128xf32>
    %c0_16 = arith.constant 0 : index
    %c0_17 = arith.constant 0 : index
    %26 = vector.load %arg4[%c0_16, %c0_17] : memref<64x128xf32, #tpu.memory_space<vmem>>, vector<64x128xf32>
    tpu.vector_store %arg4[%c0_16, %c0_17], %25 {strides = array<i32>} : memref<64x128xf32, #tpu.memory_space<vmem>>, vector<64x128xf32>,
    return
  }
  func.func @transform_0(%arg0: i32) -> (i32, i32) {
    %c0_i32 = arith.constant 0 : i32
    %c0_i32_0 = arith.constant 0 : i32
    return %arg0, %c0_i32 : i32, i32
  }
  func.func @transform_1(%arg0: i32) -> (i32, i32, i32) {
    %c0_i32 = arith.constant 0 : i32
    %c0_i32_0 = arith.constant 0 : i32
    %c0_i32_1 = arith.constant 0 : i32
    %c0_i32_2 = arith.constant 0 : i32
    return %c0_i32, %c0_i32_0, %c0_i32_1 : i32, i32, i32
  }
  func.func @transform_2(%arg0: i32) -> (i32, i32) {
    %c0_i32 = arith.constant 0 : i32
    %c0_i32_0 = arith.constant 0 : i32
    %c0_i32_1 = arith.constant 0 : i32
    return %c0_i32, %c0_i32_0 : i32, i32
  }
  func.func @transform_3(%arg0: i32) -> (i32, i32) {
    %c0_i32 = arith.constant 0 : i32
    %c0_i32_0 = arith.constant 0 : i32
    return %arg0, %c0_i32 : i32, i32
  }
}

</mosaic_0001>

<bundles_post_ra>
// kernel: _actor_forward.1
= control target key start
LH: loop header
LB: loop body
LE: loop exit
PB: predicated region body
PF: predicated region fallthrough
CT: control target
= control target key end

     0   :  { %vm43_vm0 = vcmask 261120   ;;  %s608_s1 = inlined_call_operand.vmem [shape: bf16[3,32,128], index: 1, kind: input, shape index: {}]   ;;  %s609_s0 = inlined_call_operand.vmem [shape: f32[64,32], index: 0, kind: input, shape index: {}]   ;;  %s610_s2 = inlined_call_operand.vmem [shape: f32[3,128], index: 2, kind: input, shape index: {}]   ;;  %s611_s3 = inlined_call_operand.vmem [shape: f32[64,128], index: 3, kind: output, shape index: {}]  }
   0x1   :  { %v463_v0 = vld [vmem:[%s608_s1 + $0x8] sm:$0xff]   ;;  %v464_v1 = vld [vmem:[%s608_s1] sm:$0xff]   ;;  %v17_v4 = vld [vmem:[%s609_s0 + $0x10] sm:$0xff] }
   0x2   :  { %423 = vmatprep.subr.bf16.mxu0 %v463_v0  ;;  %459 = vmatprep.subr.bf16.mxu1 %v463_v0  ;;  %v15_v2 = vld [vmem:[%s609_s0] sm:$0xff]  ;;  %v16_v3 = vld [vmem:[%s609_s0 + $0x8] sm:$0xff]  ;;  %v18_v6 = vld [vmem:[%s609_s0 + $0x18] sm:$0xff] }
   0x3   :  { %424 = vmatpush3.bf16.msra.mxu0 %v463_v0  ;;  %461 = vmatpush3.bf16.msra.mxu1 %v463_v0  ;;  %v23_v5 = vpack.c.bf16 %v16_v3, %v15_v2  ;;  %v19_v7 = vld [vmem:[%s609_s0 + $0x20] sm:$0xff]  ;;  %v20_v8 = vld [vmem:[%s609_s0 + $0x28] sm:$0xff]  ;;  %v21_v10 = vld [vmem:[%s609_s0 + $0x30] sm:$0xff]  ;;  %v24_v12 = vpack.c.bf16 %v18_v6, %v17_v4 }
   0x4   :  { %425 = vmatprep.subr.bf16.mxu0 %v464_v1  ;;  %460 = vmatprep.subr.bf16.mxu1 %v464_v1  ;;  %v25_v9 = vpack.c.bf16 %v20_v8, %v19_v7  ;;  %v22_v11 = vld [vmem:[%s609_s0 + $0x38] sm:$0xff]  ;;  %v466_v15 = vld [vmem:[%s608_s1 + $0x10] sm:$0xff]   ;;  %v382_v16 = vld [vmem:[%s610_s2] ss:$0 sm:$0xff] }
   0x5   :  { %427 = vmatprep.mubr.msk.bf16.mxu0 %vm43_vm0, %v23_v5  ;;  %v26_v13 = vpack.c.bf16 %v22_v11, %v21_v10  ;;  %v465_v14 = vld [vmem:[%s608_s1 + $0x18] sm:$0xff]   ;;  %v467_v45 = vld [vmem:[%s608_s1 + $0x28] sm:$0xff]   ;;  %v468_v46 = vld [vmem:[%s608_s1 + $0x20] sm:$0xff]  }
   0x6   :  { %431 = vmatprep.mubr.msk.bf16.mxu1 %vm43_vm0, %v25_v9  ;;  %v393_v48 = vld [vmem:[%s610_s2 + $0x1] ss:$0 sm:$0xff] }
   0x7   :  { %426 = vmatpush3.bf16.msra.mxu0 %v464_v1  ;;  %462 = vmatpush3.bf16.msra.mxu1 %v464_v1 }
   0x8   :  { %435 = vmatprep.subr.bf16.mxu1 %v465_v14  ;;  %447 = vmatprep.subr.bf16.mxu0 %v467_v45 }
   0xa   :  { %428 = vmatmul.mubr.msk.bf16.vlgmr.msra.gmra.mxu0 %vm43_vm0, %v24_v12  ;;  %432 = vmatmul.mubr.msk.bf16.vlgmr.msra.gmra.mxu1 %vm43_vm0, %v26_v13  ;;  %v398_v12 = vld [vmem:[%s610_s2 + $0x2] ss:$0 sm:$0xff] }
   0xb   :  { %436 = vmatpush3.bf16.msra.mxu1 %v465_v14  ;;  %448 = vmatpush3.bf16.msra.mxu0 %v467_v45 }
   0xc   :  { %437 = vmatprep.subr.bf16.mxu1 %v466_v15  ;;  %449 = vmatprep.subr.bf16.mxu0 %v468_v46 }
   0xf   :  { %438 = vmatpush3.bf16.msra.mxu1 %v466_v15  ;;  %450 = vmatpush3.bf16.msra.mxu0 %v468_v46 }
  0xca   :  { %v429_v17 = vpop.f32.mrf.mxu0  ;;  %v433_v18 = vpop.f32.mrf.mxu1 }
  0xcb   :  { %v128_v19 = vadd.f32 %v429_v17, %v382_v16  ;;  %v132_v31 = vadd.f32 %v433_v18, %v382_v16 }
  0xcc   :  { %v90_v20 = vpop.f32.mrf.mxu0  ;;  %v106_v21 = vpop.f32.mrf.mxu1 }
  0xcd   :  { %v126_v22 = vadd.f32 %v382_v16, %v90_v20  ;;  %v130_v23 = vadd.f32 %v382_v16, %v106_v21  ;;  %469 = vtanh.f32 %v128_v19 }
  0xce   :  { %v430_v24 = vpop.f32.mrf.mxu0  ;;  %v434_v25 = vpop.f32.mrf.mxu1 }
  0xcf   :  { %v129_v26 = vadd.f32 %v430_v24, %v382_v16  ;;  %471 = vtanh.f32 %v126_v22  ;;  %v133_v32 = vadd.f32 %v434_v25, %v382_v16 }
  0xd0   :  { %v93_v27 = vpop.f32.mrf.mxu0  ;;  %v109_v28 = vpop.f32.mrf.mxu1  ;;  %473 = vtanh.f32 %v130_v23 }
  0xd1   :  { %v127_v29 = vadd.f32 %v382_v16, %v93_v27  ;;  %v131_v30 = vadd.f32 %v382_v16, %v109_v28  ;;  %475 = vtanh.f32 %v129_v26 }
  0xd3   :  { %477 = vtanh.f32 %v127_v29 }
  0xd4   :  { %479 = vtanh.f32 %v131_v30 }
  0xd5   :  { %481 = vtanh.f32 %v132_v31 }
  0xd6   :  { %483 = vtanh.f32 %v133_v32 }
  0xda   :  { %v470_v33 = vpop.eup %469 }
  0xdc   :  { %v472_v34 = vpop.eup %471 }
  0xdd   :  { %v474_v35 = vpop.eup %473 }
  0xde   :  { %v476_v36 = vpop.eup %475 }
  0xdf   :  { %v143_v40 = vpack.c.bf16 %v476_v36, %v470_v33 }
  0xe0   :  { %v478_v37 = vpop.eup %477 }
  0xe1   :  { %v480_v38 = vpop.eup %479  ;;  %v142_v39 = vpack.c.bf16 %v478_v37, %v472_v34 }
  0xe2   :  { %v144_v41 = vpack.c.bf16 %v480_v38, %v474_v35  ;;  %v482_v42 = vpop.eup %481 }
  0xe3   :  { %439 = vmatprep.mubr.msk.bf16.mxu1 %vm43_vm0, %v142_v39  ;;  %v484_v43 = vpop.eup %483 }
  0xe4   :  { %440 = vmatmul.mubr.msk.bf16.vlgmr.msra.gmra.mxu1 %vm43_vm0, %v143_v40  ;;  %v145_v44 = vpack.c.bf16 %v484_v43, %v482_v42 }
  0xe5   :  { %443 = vmatprep.mubr.msk.bf16.mxu1 %vm43_vm0, %v144_v41 }
  0xec   :  { %444 = vmatmul.mubr.msk.bf16.gmra.mxu1 %vm43_vm0, %v145_v44 }
 0x1a4   :  { %v441_v47 = vpop.f32.mrf.mxu1 }
 0x1a5   :  { %v247_v53 = vadd.f32 %v441_v47, %v393_v48 }
 0x1a6   :  { %v209_v49 = vpop.f32.mrf.mxu1 }
 0x1a7   :  { %v245_v50 = vadd.f32 %v393_v48, %v209_v49 }
 0x1a8   :  { %v442_v51 = vpop.f32.mrf.mxu1 }
 0x1a9   :  { %v248_v52 = vadd.f32 %v442_v51, %v393_v48  ;;  %485 = vtanh.f32 %v245_v50 }
 0x1aa   :  { %v212_v54 = vpop.f32.mrf.mxu1 }
 0x1ab   :  { %v246_v55 = vadd.f32 %v393_v48, %v212_v54  ;;  %487 = vtanh.f32 %v248_v52 }
 0x1ac   :  { %v445_v56 = vpop.f32.mrf.mxu1 }
 0x1ad   :  { %489 = vtanh.f32 %v246_v55  ;;  %v251_v61 = vadd.f32 %v445_v56, %v393_v48 }
 0x1ae   :  { %491 = vtanh.f32 %v247_v53  ;;  %v225_v57 = vpop.f32.mrf.mxu1 }
 0x1af   :  { %v249_v58 = vadd.f32 %v393_v48, %v225_v57 }
 0x1b0   :  { %v446_v59 = vpop.f32.mrf.mxu1 }
 0x1b1   :  { %v252_v60 = vadd.f32 %v446_v59, %v393_v48  ;;  %493 = vtanh.f32 %v249_v58 }
 0x1b2   :  { %v228_v62 = vpop.f32.mrf.mxu1 }
 0x1b3   :  { %v250_v63 = vadd.f32 %v393_v48, %v228_v62  ;;  %495 = vtanh.f32 %v252_v60 }
 0x1b5   :  { %497 = vtanh.f32 %v250_v63 }
 0x1b6   :  { %499 = vtanh.f32 %v251_v61  ;;  %v486_v0 = vpop.eup %485 }
 0x1b8   :  { %v488_v1 = vpop.eup %487 }
 0x1ba   :  { %v490_v2 = vpop.eup %489 }
 0x1bb   :  { %v492_v3 = vpop.eup %491  ;;  %v261_v4 = vpack.c.bf16 %v490_v2, %v486_v0 }
 0x1bc   :  { %v262_v5 = vpack.c.bf16 %v488_v1, %v492_v3 }
 0x1bd   :  { %451 = vmatprep.mubr.msk.bf16.mxu0 %vm43_vm0, %v261_v4 }
 0x1be   :  { %452 = vmatmul.mubr.msk.bf16.vlgmr.msra.gmra.mxu0 %vm43_vm0, %v262_v5  ;;  %v494_v6 = vpop.eup %493 }
 0x1c0   :  { %v496_v7 = vpop.eup %495 }
 0x1c2   :  { %v498_v8 = vpop.eup %497 }
 0x1c3   :  { %v500_v9 = vpop.eup %499  ;;  %v263_v10 = vpack.c.bf16 %v498_v8, %v494_v6 }
 0x1c4   :  { %v264_v11 = vpack.c.bf16 %v496_v7, %v500_v9 }
 0x1c5   :  { %455 = vmatprep.mubr.msk.bf16.mxu0 %vm43_vm0, %v263_v10 }
 0x1c6   :  { %456 = vmatmul.mubr.msk.bf16.gmra.mxu0 %vm43_vm0, %v264_v11 }
 0x27e   :  { %v453_v13 = vpop.f32.mrf.mxu0 }
 0x27f   :  { %v342_v14 = vadd.f32 %v453_v13, %v398_v12 }
 0x280   :  { %v333_v15 = vpop.f32.mrf.mxu0 }
 0x281   :  { %366 = vst [vmem:[%s611_s3 + $0x10] sm:$0xff] %v342_v14  ;;  %v334_v16 = vadd.f32 %v398_v12, %v333_v15 }
 0x282   :  { %v454_v17 = vpop.f32.mrf.mxu0 }
 0x283   :  { %364 = vst [vmem:[%s611_s3] sm:$0xff] %v334_v16  ;;  %v345_v18 = vadd.f32 %v454_v17, %v398_v12 }
 0x284   :  { %v336_v19 = vpop.f32.mrf.mxu0 }
 0x285   :  { %367 = vst [vmem:[%s611_s3 + $0x18] sm:$0xff] %v345_v18  ;;  %v337_v20 = vadd.f32 %v398_v12, %v336_v19 }
 0x286   :  { %v457_v21 = vpop.f32.mrf.mxu0 }
 0x287   :  { %365 = vst [vmem:[%s611_s3 + $0x8] sm:$0xff] %v337_v20  ;;  %v358_v22 = vadd.f32 %v457_v21, %v398_v12 }
 0x288   :  { %v349_v23 = vpop.f32.mrf.mxu0 }
 0x289   :  { %370 = vst [vmem:[%s611_s3 + $0x30] sm:$0xff] %v358_v22  ;;  %v350_v24 = vadd.f32 %v398_v12, %v349_v23 }
 0x28a   :  { %v458_v25 = vpop.f32.mrf.mxu0 }
 0x28b   :  { %368 = vst [vmem:[%s611_s3 + $0x20] sm:$0xff] %v350_v24  ;;  %v361_v26 = vadd.f32 %v458_v25, %v398_v12 }
 0x28c   :  { %v352_v27 = vpop.f32.mrf.mxu0 }
 0x28d   :  { %371 = vst [vmem:[%s611_s3 + $0x38] sm:$0xff] %v361_v26  ;;  %v353_v28 = vadd.f32 %v398_v12, %v352_v27 }
 0x28f   :  { %369 = vst [vmem:[%s611_s3 + $0x28] sm:$0xff] %v353_v28 }

</bundles_post_ra>
